<compile_context>
chip_gen: v7x
topology: tpu7x:2x2x1
jax: 0.10.0
libtpu: 0.0.40
codegen_flags: <defaults>
</compile_context>

<pallas_src>
import functools

import jax
import jax.numpy as jnp
from jax import lax
from jax.experimental import pallas as pl
from jax.experimental.pallas import tpu as pltpu

ALPHA = 1.0
GAMMA = 2.0
REDUCTION = "mean"  # matches default FocalLoss(reduction='mean')


def _focal_loss_kernel(logits_ref, targets_ref, out_ref, *, n_total, block_n,
                       needs_mask):
    # logits_ref:  (block_n, C) in VMEM (any float dtype; upcast here)
    # targets_ref: (block_n, 1) int32 in VMEM
    # out_ref:     (1, 8, 128) f32 — this block's partial sum, replicated over
    #              one vreg so the store is a single unmasked lane-dense vst.
    i = pl.program_id(0)

    logits = logits_ref[...].astype(jnp.float32)              # (bn, C)
    tgt = targets_ref[...]                                    # (bn, 1) int32
    bn, c = logits.shape

    # (1, C) iota, broadcast against (bn, 1) targets in the compare.
    col_ids = lax.broadcasted_iota(jnp.int32, (1, c), 1)
    one_hot = col_ids == tgt                                  # (bn, C) bool

    # numerically-stable log-softmax cross entropy (reduction='none')
    row_max = jnp.max(logits, axis=-1, keepdims=True)         # (bn, 1)
    shifted = logits - row_max                                 # <= 0
    sum_exp = jnp.sum(jnp.exp(shifted), axis=-1, keepdims=True)          # (bn,1)
    picked_shifted = jnp.sum(jnp.where(one_hot, shifted, 0.0),
                             axis=-1, keepdims=True)                      # (bn,1)
    ce = jnp.log(sum_exp) - picked_shifted                    # per-sample CE

    # pt = exp(-ce) = exp(picked_shifted) / sum_exp  (reuse sum_exp, 1 exp saved)
    pt = jnp.exp(picked_shifted) * pl.reciprocal(sum_exp)

    x = 1.0 - pt
    if GAMMA == 2.0:
        focal_w = x * x                                       # single VPU mul
    else:
        focal_w = jnp.maximum(x, 0.0) ** GAMMA                # avoid NaN for x<0
    focal = ALPHA * focal_w * ce                              # (bn, 1)

    def _write(partial_sum):
        out_ref[...] = jnp.broadcast_to(partial_sum, out_ref.shape).astype(
            out_ref.dtype)

    if needs_mask:
        is_last = i == pl.num_programs(0) - 1

        @pl.when(is_last)
        def _masked():
            # Select (not multiply) so NaN/Inf from garbage padded rows of the
            # last partial block cannot propagate into the sum.
            row_ids = i * block_n + lax.broadcasted_iota(jnp.int32, (bn, 1), 0)
            _write(jnp.sum(jnp.where(row_ids < n_total, focal, 0.0)))

        @pl.when(jnp.logical_not(is_last))
        def _full():
            _write(jnp.sum(focal))
    else:
        _write(jnp.sum(focal))


def _choose_block_n(n, c, itemsize):
    """Rows per tile: ~4 MiB f32 working tile, rounded to sublane packing."""
    sub = {1: 32, 2: 16, 4: 8}.get(int(itemsize), 8)   # rows per packed vreg
    target_f32_bytes = 4 * 1024 * 1024                 # f32 working-set target
    bn = (target_f32_bytes // max(1, c * 4)) // sub * sub
    bn = max(bn, sub)
    if bn >= n:
        return int(n)        # single full-extent block (always a legal block)
    return int(bn)


def focal_loss(logits, targets, *, block_n=None):
    """logits: (N, C) float (f32 or bf16); targets: (N,) int class indices.

    Returns scalar f32 focal loss (alpha=1, gamma=2, reduction='mean').
    """
    n, c = logits.shape
    targets2d = targets.astype(jnp.int32).reshape(n, 1)
    if block_n is None:
        block_n = _choose_block_n(n, c, logits.dtype.itemsize)
    n_blocks = pl.cdiv(n, block_n)
    needs_mask = (n % block_n) != 0

    kernel = functools.partial(_focal_loss_kernel, n_total=n, block_n=block_n,
                               needs_mask=needs_mask)

    # Independent per-block partial sums -> "parallel" grid axis (both TCs on
    # v7x); final reduce + mean in the wrapper.
    partials = pl.pallas_call(
        kernel,
        out_shape=jax.ShapeDtypeStruct((n_blocks, 8, 128), jnp.float32),
        grid=(n_blocks,),
        in_specs=[
            pl.BlockSpec((block_n, c), lambda i: (i, 0)),   # logits tile
            pl.BlockSpec((block_n, 1), lambda i: (i, 0)),   # targets tile
        ],
        out_specs=pl.BlockSpec((1, 8, 128), lambda i: (i, 0, 0)),
        compiler_params=pltpu.CompilerParams(
            dimension_semantics=("parallel",),
            vmem_limit_bytes=32 * 1024 * 1024,
        ),
    )(logits, targets2d)      # NOTE: no wrapper-side astype -> bf16 stays bf16

    total = jnp.sum(partials[:, 0, 0])
    if REDUCTION == "mean":
        return total / jnp.float32(n)
    return total


def _reference(logits, targets):
    logits = logits.astype(jnp.float32)
    n = logits.shape[0]
    lse = jax.scipy.special.logsumexp(logits, axis=-1)
    ce = lse - logits[jnp.arange(n), targets]
    pt = jnp.exp(-ce)
    f = ALPHA * (1.0 - pt) ** GAMMA * ce
    return jnp.mean(f) if REDUCTION == "mean" else jnp.sum(f)


if __name__ == "__main__":
    key = jax.random.PRNGKey(0)
    k1, k2, k3, k4, k5, k6 = jax.random.split(key, 6)

    # Test 1: small single-block case (N=8, C=32), f32 logits.
    N1, C1 = 8, 32
    logits1 = jax.random.normal(k1, (N1, C1), dtype=jnp.float32)
    targets1 = jax.random.randint(k2, (N1,), 0, C1, dtype=jnp.int32)
    loss1 = focal_loss(logits1, targets1)
    jax.block_until_ready(loss1)
    ref1 = _reference(logits1, targets1)
    assert jnp.allclose(loss1, ref1, rtol=1e-5, atol=1e-6), (loss1, ref1)

    # Test 2: multi-block parallel grid + masked partial last block
    # (N=20 with block_n=8 -> 3 grid steps, last block has 4 padded rows).
    N2, C2 = 20, 32
    logits2 = jax.random.normal(k3, (N2, C2), dtype=jnp.float32)
    targets2 = jax.random.randint(k4, (N2,), 0, C2, dtype=jnp.int32)
    loss2 = focal_loss(logits2, targets2, block_n=8)
    jax.block_until_ready(loss2)
    ref2 = _reference(logits2, targets2)
    assert jnp.allclose(loss2, ref2, rtol=1e-5, atol=1e-6), (loss2, ref2)

    # Test 3: bf16 logits stay bf16 in HBM; upcast happens in VMEM.
    N3, C3 = 16, 64
    logits3 = jax.random.normal(k5, (N3, C3), dtype=jnp.bfloat16)
    targets3 = jax.random.randint(k6, (N3,), 0, C3, dtype=jnp.int32)
    loss3 = focal_loss(logits3, targets3)
    jax.block_until_ready(loss3)
    ref3 = _reference(logits3, targets3)
    assert jnp.allclose(loss3, ref3, rtol=1e-3, atol=1e-5), (loss3, ref3)

    print("KERNEL_OK")
</pallas_src>

<mosaic_0001>
module attributes {stable_mosaic.version = 11 : i64} {
  func.func @_focal_loss_kernel(%arg0: i32, %arg1: memref<8x32xf32, #tpu.memory_space<vmem>>, %arg2: memref<8x1xi32, #tpu.memory_space<vmem>>, %arg3: memref<1x8x128xf32, #tpu.memory_space<vmem>>) attributes {dimension_semantics = [#tpu.dimension_semantics<parallel>], iteration_bounds = array<i64: 1>, scalar_prefetch = 0 : i64, scratch_operands = 0 : i64, tpu.core_type = #tpu.core_type<tc>, window_params = [{transform_indices = @transform_0, window_bounds = array<i64: 8, 32>}, {transform_indices = @transform_1, window_bounds = array<i64: 8, 1>}, {transform_indices = @transform_2, window_bounds = array<i64: 1, 8, 128>}]} {
    %c0 = arith.constant 0 : index
    %c0_0 = arith.constant 0 : index
    %0 = vector.load %arg1[%c0, %c0_0] : memref<8x32xf32, #tpu.memory_space<vmem>>, vector<8x32xf32>
    %c0_1 = arith.constant 0 : index
    %c0_2 = arith.constant 0 : index
    %1 = vector.load %arg2[%c0_1, %c0_2] : memref<8x1xi32, #tpu.memory_space<vmem>>, vector<8x1xi32>
    %2 = tpu.iota {dimensions = array<i32: 1>} : vector<1x32xi32>
    %3 = vector.broadcast %2 : vector<1x32xi32> to vector<8x32xi32>
    %4 = vector.broadcast %1 : vector<8x1xi32> to vector<8x32xi32>
    %5 = arith.cmpi eq, %3, %4 : vector<8x32xi32>
    %cst = arith.constant dense<0xFF800000> : vector<8xf32>
    %6 = vector.multi_reduction <maximumf>, %0, %cst [1] : vector<8x32xf32> to vector<8xf32>
    %7 = vector.shape_cast %6 : vector<8xf32> to vector<8x1xf32>
    %8 = vector.broadcast %7 : vector<8x1xf32> to vector<8x32xf32>
    %9 = arith.subf %0, %8 : vector<8x32xf32>
    %10 = math.exp %9 : vector<8x32xf32>
    %cst_3 = arith.constant dense<0.000000e+00> : vector<8xf32>
    %11 = vector.multi_reduction <add>, %10, %cst_3 [1] : vector<8x32xf32> to vector<8xf32>
    %12 = vector.shape_cast %11 : vector<8xf32> to vector<8x1xf32>
    %cst_4 = arith.constant 0.000000e+00 : f32
    %13 = vector.broadcast %cst_4 : f32 to vector<8x32xf32>
    %14 = arith.select %5, %9, %13 : vector<8x32xi1>, vector<8x32xf32>
    %cst_5 = arith.constant dense<0.000000e+00> : vector<8xf32>
    %15 = vector.multi_reduction <add>, %14, %cst_5 [1] : vector<8x32xf32> to vector<8xf32>
    %16 = vector.shape_cast %15 : vector<8xf32> to vector<8x1xf32>
    %17 = math.log %12 : vector<8x1xf32>
    %18 = arith.subf %17, %16 : vector<8x1xf32>
    %19 = math.exp %16 : vector<8x1xf32>
    %20 = tpu.reciprocal %12 : vector<8x1xf32> -> vector<8x1xf32>
    %21 = arith.mulf %19, %20 : vector<8x1xf32>
    %cst_6 = arith.constant 1.000000e+00 : f32
    %22 = vector.broadcast %cst_6 : f32 to vector<8x1xf32>
    %23 = arith.subf %22, %21 : vector<8x1xf32>
    %24 = arith.mulf %23, %23 : vector<8x1xf32>
    %cst_7 = arith.constant 1.000000e+00 : f32
    %25 = vector.broadcast %cst_7 : f32 to vector<8x1xf32>
    %26 = arith.mulf %25, %24 : vector<8x1xf32>
    %27 = arith.mulf %26, %18 : vector<8x1xf32>
    %28 = vector.shape_cast %27 : vector<8x1xf32> to vector<1x8x1xf32>
    %cst_8 = arith.constant dense<0.000000e+00> : vector<1xf32>
    %29 = vector.multi_reduction <add>, %28, %cst_8 [1, 2] : vector<1x8x1xf32> to vector<1xf32>
    %30 = vector.shape_cast %29 : vector<1xf32> to vector<1x1x1xf32>
    %31 = vector.extract %30[0, 0, 0] : f32 from vector<1x1x1xf32>
    %32 = vector.broadcast %31 : f32 to vector<1x8x128xf32>
    %c0_9 = arith.constant 0 : index
    %c0_10 = arith.constant 0 : index
    %c0_11 = arith.constant 0 : index
    %33 = vector.load %arg3[%c0_9, %c0_10, %c0_11] : memref<1x8x128xf32, #tpu.memory_space<vmem>>, vector<1x8x128xf32>
    tpu.vector_store %arg3[%c0_9, %c0_10, %c0_11], %32 {strides = array<i32>} : memref<1x8x128xf32, #tpu.memory_space<vmem>>, vector<1x8x128xf32>,
    return
  }
  func.func @transform_0(%arg0: i32) -> (i32, i32) {
    %c0_i32 = arith.constant 0 : i32
    %c0_i32_0 = arith.constant 0 : i32
    return %arg0, %c0_i32 : i32, i32
  }
  func.func @transform_1(%arg0: i32) -> (i32, i32) {
    %c0_i32 = arith.constant 0 : i32
    %c0_i32_0 = arith.constant 0 : i32
    return %arg0, %c0_i32 : i32, i32
  }
  func.func @transform_2(%arg0: i32) -> (i32, i32, i32) {
    %c0_i32 = arith.constant 0 : i32
    %c0_i32_0 = arith.constant 0 : i32
    %c0_i32_1 = arith.constant 0 : i32
    return %arg0, %c0_i32, %c0_i32_0 : i32, i32, i32
  }
}

</mosaic_0001>

<bundles_post_ra>
// kernel: tpu_custom_call.1
= control target key start
LH: loop header
LB: loop body
LE: loop exit
PB: predicated region body
PF: predicated region fallthrough
CT: control target
= control target key end

     0   :  { %vm20_vm0 = vcmask 261120   ;;  %s146_s0 = inlined_call_operand.vmem [shape: f32[8,32], index: 0, kind: input, shape index: {}]   ;;  %s147_s1 = inlined_call_operand.vmem [shape: s32[8,1], index: 1, kind: input, shape index: {}]   ;;  %s148_s2 = inlined_call_operand.hbm [shape: f32[1,8,128], index: 2, kind: output, shape index: {}]  }
   0x1   :  { %v12_v0 = vld [vmem:[%s146_s0] sm:$0xff] }
   0x2   :  { %7 = vsyncpa [#allocation3], 0  ;;  %v21_v1 = vsel %vm20_vm0, %v12_v0, -inf  ;;  %v108_v2 = vmov 0   ;;  %v13_v3 = vld [vmem:[%s147_s1] sm:$0xff]  ;;  %v14_v6 = vlaneseq  ;;  %vm44_vm2 = vcmask 7168  }
   0x3   :  { %75 = vset.pattern.permute.xlu0 %v108_v2  ;;  %s109_s0 = smov [#allocation2]  }
   0x4   :  { %22 = vmax.xlane.f32.xlu0 %v21_v1  ;;  %v15_v8 = vand.u32 127, %v14_v6  ;;  %s63_s1 = sshll.u32 %s109_s0, 4  ;;  %s64_s1 = int_to_ptr.vmem [resolvable:$true] %s63_s1 }
   0x5   :  { %s84_s14 = scalar_lea.vmem %s64_s1, 128  ;;  %p89_p1 = scmp.lt.s32.totalorder %s64_s1, %s64_s1 }
   0x6   :  { %p85_p0 = scmp.ne.s32.totalorder %s64_s1, %s84_s14  ;;  %p90_p2 = scmp.lt.s32.totalorder %s84_s14, %s84_s14 }
   0x8   :  { %p91_p3 = por %p90_p2, %p89_p1 }
   0xa   :  { %p92_p4 = pnand %p91_p3, %p85_p0 }
  0x1a   :  { %17 = vperm.xlu0 %75, %v13_v3  }
  0x91   :  { %v23_v4 = vpop.xlane.xlu0 %22 }
  0x92   :  { %v24_v5 = vsub.f32 %v12_v0, %v23_v4 }
  0x94   :  { %v25_v7 = vmul.f32 1.442695, %v24_v5 }
  0x96   :  { %76 = vpow2.f32 %v25_v7 }
  0x99   :  { %v18_v9 = vpop.permute.xlu0 %17 }
  0x9a   :  { %vm19_vm1 = vcmp.eq.s32.totalorder %v15_v8, %v18_v9 }
  0x9b   :  { %v30_v10 = vsel %vm19_vm1, %v24_v5, 0.0 }
  0x9c   :  { %v31_v11 = vsel %vm20_vm0, %v30_v10, 0.0 }
  0x9d   :  { %32 = vadd.xlane.f32.xlu1 %v31_v11 }
  0xa0   :  { %v77_v12 = vpop.eup %76 }
  0xa1   :  { %v27_v13 = vsel %vm20_vm0, %v77_v12, 0.0 }
  0xa2   :  { %28 = vadd.xlane.f32.xlu1 %v27_v13 }
 0x12a   :  { %v33_v14 = vpop.xlane.xlu1 %32 }
 0x12b   :  { %v37_v15 = vmul.f32 1.442695, %v33_v14 }
 0x12d   :  { %78 = vpow2.f32 %v37_v15 }
 0x12f   :  { %v29_v16 = vpop.xlane.xlu1 %28 }
 0x130   :  { %80 = vlog2.f32 %v29_v16 }
 0x131   :  { %82 = vrcp.f32 %v29_v16 }
 0x137   :  { %v79_v17 = vpop.eup %78 }
 0x13a   :  { %v81_v18 = vpop.eup %80 }
 0x13b   :  { %v83_v19 = vpop.eup %82  ;;  %v35_v20 = vmul.f32 0.6931472, %v81_v18 }
 0x13c   :  { %v40_v21 = vmul.f32 %v83_v19, %v79_v17 }
 0x13d   :  { %v36_v23 = vsub.f32 %v35_v20, %v33_v14 }
 0x13e   :  { %v41_v22 = vsub.f32 1.0, %v40_v21 }
 0x140   :  { %v42_v24 = vmul.f32 %v41_v22, %v41_v22 }
 0x142   :  { %v43_v25 = vmul.f32 %v42_v24, %v36_v23 }
 0x144   :  { %v45_v26 = vsel %vm44_vm2, %v43_v25, 0.0 }
 0x145   :  { %46 = vadd.xlane.f32.xlu1 %v45_v26 }
 0x1d2   :  { %v47_v27 = vpop.xlane.xlu1 %46 }
 0x1d3   :  { %v48_v28 = vrot.slane %v47_v27, 4 }
 0x1d5   :  { %v49_v29 = vadd.f32 %v48_v28, %v47_v27 }
 0x1d7   :  { %v50_v30 = vrot.slane %v49_v29, 2 }
 0x1d9   :  { %v51_v31 = vadd.f32 %v50_v30, %v49_v29 }
 0x1db   :  { %v52_v32 = vrot.slane %v51_v31, 1 }
 0x1dd   :  { %v53_v33 = vadd.f32 %v52_v32, %v51_v31 }
 0x1df   :  { %71 = vpush %v53_v33 }
 0x210   :  { %s72_s13 = spop %71 }
 0x211   :  { %v55_v34 = vstv %s72_s13 }
 0x212   :  { %56 = vst [vmem:[#allocation2] sm:$0xff] %v55_v34 }
 0x213   :  { %95 = shalt.err (!%p92_p4)
}
 0x214   :  { %s96_s17 = scalar_lea.hbm %s148_s2, 128 }
 0x215   :  { %p97_p5 = scmp.ne.s32.totalorder %s148_s2, %s96_s17  ;;  %p100_p6 = scmp.lt.u32.totalorder %s96_s17, %s148_s2 }
 0x217   :  { %p102_p7 = pnand %p100_p6, %p97_p5 }
 0x219   :  { %105 = shalt.err (!%p102_p7)
}
 0x21a   :  { %66 = dma.vmem_to_hbm [thread:$0]  %s64_s1, 128, %s148_s2, [#allocation3]  }
 0x21b   :  { %106 = dma.done.wait [#allocation3], 128  }
 0x21c   :  { %107 = vsyncadd [#allocation3], 4294967168 }
 0x21d   :  { %70 = vsyncpa [#allocation3], 1 }

</bundles_post_ra>
